<compile_context>
chip_gen: v5e
topology: v5e:2x2
jax: 0.10.0
libtpu: 0.0.40
codegen_flags: <defaults>
</compile_context>

<pallas_src>
import functools

import jax
import jax.numpy as jnp
from jax.experimental import pallas as pl
from jax.experimental.pallas import tpu as pltpu


# ----------------------------- Pallas kernel -----------------------------

def _layernorm_kernel(x_ref, a_ref, b_ref, o_ref):
    # x: (TILE_N, D) f32, a/b: (1, D) f32 (VMEM-resident across the grid)
    x = x_ref[...]
    d = x.shape[-1]
    mean = jnp.sum(x, axis=-1, keepdims=True) * (1.0 / d)
    diff = x - mean
    # torch unbiased std: sum((x - mu)^2) / (d - 1)
    var = jnp.sum(diff * diff, axis=-1, keepdims=True) * (1.0 / (d - 1))
    std = jnp.sqrt(var)
    # eps added to std (torch module semantics); reciprocal on the EUP slot.
    inv = pl.reciprocal(std + 1e-7, approx=True)          # (TILE_N, 1)
    o_ref[...] = diff * (a_ref[...] * inv) + b_ref[...]


# ----------------------------- wrapper -----------------------------

def _row_tile(n_rows, d, block_rows):
    """Sublane-aligned row tile whose double-buffered in+out f32 tiles fit ~32 MiB."""
    budget_bytes = 32 * 1024 * 1024
    # 2 buffers (pipeline) x (input tile + output tile), f32
    max_rows = max(8, budget_bytes // (4 * d * 4))
    tile = min(block_rows, max_rows, n_rows)
    if n_rows > 8:
        tile = max(8, (tile // 8) * 8)        # multiple of 8 (sublane dim)
    else:
        tile = n_rows                         # full-extent block is always legal
    return tile


@functools.partial(jax.jit, static_argnames=("block_rows",))
def pallas_layernorm(x, alpha, bias, *, block_rows=512):
    orig_shape = x.shape
    d = orig_shape[-1]
    x2d = x.reshape(-1, d).astype(jnp.float32)
    n = x2d.shape[0]

    tile_n = _row_tile(n, d, block_rows)
    grid = (pl.cdiv(n, tile_n),)              # partial tail tile handled by Pallas

    out = pl.pallas_call(
        _layernorm_kernel,
        out_shape=jax.ShapeDtypeStruct((n, d), jnp.float32),
        grid=grid,
        in_specs=[
            pl.BlockSpec((tile_n, d), lambda i: (i, 0)),   # x: tiled over rows
            pl.BlockSpec((1, d), lambda i: (0, 0)),        # alpha: resident
            pl.BlockSpec((1, d), lambda i: (0, 0)),        # bias:  resident
        ],
        out_specs=pl.BlockSpec((tile_n, d), lambda i: (i, 0)),
        compiler_params=pltpu.CompilerParams(
            dimension_semantics=("parallel",),             # megacore on v7x
            vmem_limit_bytes=40 * 1024 * 1024,             # > v5e 16 MiB default, < v7x 64 MiB physical
        ),
    )(x2d, alpha.reshape(1, d).astype(jnp.float32), bias.reshape(1, d).astype(jnp.float32))

    return out.reshape(orig_shape)


# --------------------------- pure-JAX reference ---------------------------

def ref_layernorm(x, alpha, bias):
    d = x.shape[-1]
    mean = jnp.mean(x, axis=-1, keepdims=True)
    diff = x - mean
    std = jnp.sqrt(jnp.sum(diff * diff, axis=-1, keepdims=True) / (d - 1))
    return alpha * diff / (std + 1e-7) + bias


# ------------------------------ main ------------------------------

if __name__ == "__main__":
    key = jax.random.PRNGKey(0)
    kx, ka, kb, ky = jax.random.split(key, 4)

    # Small shapes consistent with the module; D=128 keeps the output lane-dense.
    B, S, D = 2, 8, 128
    x = jax.random.normal(kx, (B, S, D), jnp.float32)
    alpha = 1.0 + 0.1 * jax.random.normal(ka, (D,), jnp.float32)
    bias = 0.1 * jax.random.normal(kb, (D,), jnp.float32)

    out = jax.block_until_ready(pallas_layernorm(x, alpha, bias))
    ref = ref_layernorm(x, alpha, bias)
    assert out.shape == x.shape
    assert bool(jnp.all(jnp.isfinite(out)))
    err = float(jnp.max(jnp.abs(out - ref)))
    assert err < 1e-2, f"Pallas LayerNorm mismatch vs JAX reference: {err}"

    # Second case: row count not a multiple of the row tile (exercises the
    # padded tail block of the grid) and a different leading-dim layout.
    x2 = jax.random.normal(ky, (3, 7, D), jnp.float32)
    out2 = jax.block_until_ready(pallas_layernorm(x2, alpha, bias))
    err2 = float(jnp.max(jnp.abs(out2 - ref_layernorm(x2, alpha, bias))))
    assert err2 < 1e-2, f"Pallas LayerNorm (ragged rows) mismatch: {err2}"

    print("KERNEL_OK")
</pallas_src>

<mosaic_0001>
module attributes {stable_mosaic.version = 11 : i64} {
  func.func @_layernorm_kernel(%arg0: i32, %arg1: memref<16x128xf32, #tpu.memory_space<vmem>>, %arg2: memref<1x128xf32, #tpu.memory_space<vmem>>, %arg3: memref<1x128xf32, #tpu.memory_space<vmem>>, %arg4: memref<16x128xf32, #tpu.memory_space<vmem>>) attributes {dimension_semantics = [#tpu.dimension_semantics<parallel>], iteration_bounds = array<i64: 1>, scalar_prefetch = 0 : i64, scratch_operands = 0 : i64, tpu.core_type = #tpu.core_type<tc>, window_params = [{transform_indices = @transform_0, window_bounds = array<i64: 16, 128>}, {pipeline_mode = #tpu.pipeline_mode<synchronous>, transform_indices = @transform_1, window_bounds = array<i64: 1, 128>}, {pipeline_mode = #tpu.pipeline_mode<synchronous>, transform_indices = @transform_2, window_bounds = array<i64: 1, 128>}, {transform_indices = @transform_3, window_bounds = array<i64: 16, 128>}]} {
    %c0 = arith.constant 0 : index
    %c0_0 = arith.constant 0 : index
    %0 = vector.load %arg1[%c0, %c0_0] : memref<16x128xf32, #tpu.memory_space<vmem>>, vector<16x128xf32>
    %cst = arith.constant dense<0.000000e+00> : vector<16xf32>
    %1 = vector.multi_reduction <add>, %0, %cst [1] : vector<16x128xf32> to vector<16xf32>
    %2 = vector.shape_cast %1 : vector<16xf32> to vector<16x1xf32>
    %cst_1 = arith.constant 7.812500e-03 : f32
    %3 = vector.broadcast %cst_1 : f32 to vector<16x1xf32>
    %4 = arith.mulf %2, %3 : vector<16x1xf32>
    %5 = vector.broadcast %4 : vector<16x1xf32> to vector<16x128xf32>
    %6 = arith.subf %0, %5 : vector<16x128xf32>
    %7 = arith.mulf %6, %6 : vector<16x128xf32>
    %cst_2 = arith.constant dense<0.000000e+00> : vector<16xf32>
    %8 = vector.multi_reduction <add>, %7, %cst_2 [1] : vector<16x128xf32> to vector<16xf32>
    %9 = vector.shape_cast %8 : vector<16xf32> to vector<16x1xf32>
    %cst_3 = arith.constant 0.00787401571 : f32
    %10 = vector.broadcast %cst_3 : f32 to vector<16x1xf32>
    %11 = arith.mulf %9, %10 : vector<16x1xf32>
    %12 = math.sqrt %11 : vector<16x1xf32>
    %cst_4 = arith.constant 1.000000e-07 : f32
    %13 = vector.broadcast %cst_4 : f32 to vector<16x1xf32>
    %14 = arith.addf %12, %13 : vector<16x1xf32>
    %15 = tpu.reciprocal %14 {approx = true} : vector<16x1xf32> -> vector<16x1xf32>
    %c0_5 = arith.constant 0 : index
    %c0_6 = arith.constant 0 : index
    %16 = vector.load %arg2[%c0_5, %c0_6] : memref<1x128xf32, #tpu.memory_space<vmem>>, vector<1x128xf32>
    %17 = vector.broadcast %16 : vector<1x128xf32> to vector<16x128xf32>
    %18 = vector.broadcast %15 : vector<16x1xf32> to vector<16x128xf32>
    %19 = arith.mulf %17, %18 : vector<16x128xf32>
    %20 = arith.mulf %6, %19 : vector<16x128xf32>
    %c0_7 = arith.constant 0 : index
    %c0_8 = arith.constant 0 : index
    %21 = vector.load %arg3[%c0_7, %c0_8] : memref<1x128xf32, #tpu.memory_space<vmem>>, vector<1x128xf32>
    %22 = vector.broadcast %21 : vector<1x128xf32> to vector<16x128xf32>
    %23 = arith.addf %20, %22 : vector<16x128xf32>
    %c0_9 = arith.constant 0 : index
    %c0_10 = arith.constant 0 : index
    %24 = vector.load %arg4[%c0_9, %c0_10] : memref<16x128xf32, #tpu.memory_space<vmem>>, vector<16x128xf32>
    tpu.vector_store %arg4[%c0_9, %c0_10], %23 {strides = array<i32>} : memref<16x128xf32, #tpu.memory_space<vmem>>, vector<16x128xf32>,
    return
  }
  func.func @transform_0(%arg0: i32) -> (i32, i32) {
    %c0_i32 = arith.constant 0 : i32
    %c0_i32_0 = arith.constant 0 : i32
    return %arg0, %c0_i32 : i32, i32
  }
  func.func @transform_1(%arg0: i32) -> (i32, i32) {
    %c0_i32 = arith.constant 0 : i32
    %c0_i32_0 = arith.constant 0 : i32
    %c0_i32_1 = arith.constant 0 : i32
    return %c0_i32, %c0_i32_0 : i32, i32
  }
  func.func @transform_2(%arg0: i32) -> (i32, i32) {
    %c0_i32 = arith.constant 0 : i32
    %c0_i32_0 = arith.constant 0 : i32
    %c0_i32_1 = arith.constant 0 : i32
    return %c0_i32, %c0_i32_0 : i32, i32
  }
  func.func @transform_3(%arg0: i32) -> (i32, i32) {
    %c0_i32 = arith.constant 0 : i32
    %c0_i32_0 = arith.constant 0 : i32
    return %arg0, %c0_i32 : i32, i32
  }
}

</mosaic_0001>

<bundles_post_ra>
// kernel: pallas_layernorm.1
= control target key start
LH: loop header
LB: loop body
LE: loop exit
PB: predicated region body
PF: predicated region fallthrough
CT: control target
= control target key end

     0   :  { %8 = vsyncpa [#allocation3], 0  ;;  %s220_s0 = inlined_call_operand.hbm [shape: f32[16,128], index: 0, kind: input, shape index: {}]   ;;  %s221_s1 = inlined_call_operand.vmem [shape: f32[1,128], index: 1, kind: input, shape index: {}]   ;;  %s222_s2 = inlined_call_operand.vmem [shape: f32[1,128], index: 2, kind: input, shape index: {}]   ;;  %s223_s3 = inlined_call_operand.hbm [shape: f32[16,128], index: 3, kind: output, shape index: {}]  }
   0x1   :  { %9 = vsyncpa [#allocation4], 0  ;;  %s14_s14 = sshll.u32 %s220_s0, 4  ;;  %s178_s15 = smov [#allocation2]   ;;  %s15_s14 = int_to_ptr.hbm [resolvable:$true] %s14_s14 }
   0x2   :  { %s16_s16 = sshll.u32 %s178_s15, 4  ;;  %s179_s17 = smov 128   ;;  %s17_s16 = int_to_ptr.vmem [resolvable:$true] %s16_s16 }
   0x3   :  { %s180_s18 = smov 8  }
   0x4   :  { %22 = dma.hbm_to_vmem [thread:$0]  %s15_s14, 256, %s17_s16, [#allocation3], %s179_s17, %s179_s17, %s180_s18  }
   0x5   :  { %174 = dma.done.wait [#allocation3], 256  }
   0x6   :  { %175 = vsyncadd [#allocation3], 4294967040  ;;  %v31_v0 = vld [vmem:[#allocation2] sm:$0xff]  ;;  %v32_v1 = vld [vmem:[#allocation2 + $0x8] sm:$0xff]  ;;  %s181_s22 = smov [#allocation5]   ;;  %s99_s25 = sshll.u32 %s223_s3, 4  ;;  %s100_s25 = int_to_ptr.hbm [resolvable:$true] %s99_s25 }
   0x7   :  { %33 = vadd.xlane.f32.xlu0 %v31_v0  ;;  %v116_v33 = vld [vmem:[%s221_s1] ss:$0 sm:$0xff]  ;;  %s97_s23 = sshll.u32 %s181_s22, 4  ;;  %s98_s23 = int_to_ptr.vmem [resolvable:$true] %s97_s23 }
   0x8   :  { %v117_v39 = vld [vmem:[%s222_s2] ss:$0 sm:$0xff] }
   0xf   :  { %35 = vadd.xlane.f32.xlu0 %v32_v1 }
  0x7a   :  { %v34_v2 = vpop.xlane.xlu0 %33 }
  0x7b   :  { %v37_v3 = vmul.f32 0.0078125, %v34_v2 }
  0x7d   :  { %v39_v4 = vsub.f32 %v31_v0, %v37_v3 }
  0x7f   :  { %v41_v5 = vmul.f32 %v39_v4, %v39_v4 }
  0x81   :  { %43 = vadd.xlane.f32.xlu1 %v41_v5 }
  0x82   :  { %v36_v6 = vpop.xlane.xlu0 %35 }
  0x83   :  { %v38_v7 = vmul.f32 0.0078125, %v36_v6 }
  0x85   :  { %v40_v8 = vsub.f32 %v32_v1, %v38_v7 }
  0x87   :  { %v42_v9 = vmul.f32 %v40_v8, %v40_v8 }
  0x89   :  { %45 = vadd.xlane.f32.xlu1 %v42_v9 }
  0xf4   :  { %v44_v10 = vpop.xlane.xlu1 %43 }
  0xf5   :  { %v47_v11 = vmul.f32 0.007874016, %v44_v10 }
  0xf7   :  { %118 = vrsqrt.f32 %v47_v11  ;;  %vm56_vm0 = vcmp.eq.f32.partialorder %v47_v11, inf  ;;  %v59_v24 = vand.u32 2147483648, %v47_v11  ;;  %vm58_vm1 = vcmp.eq.f32.partialorder %v47_v11, 0.0 }
  0xfc   :  { %v46_v12 = vpop.xlane.xlu1 %45 }
  0xfd   :  { %v119_v13 = vpop.eup %118  ;;  %v48_v14 = vmul.f32 0.007874016, %v46_v12 }
  0xfe   :  { %v50_v15 = vmul.f32 %v119_v13, %v47_v11 }
  0xff   :  { %120 = vrsqrt.f32 %v48_v14  ;;  %vm68_vm2 = vcmp.eq.f32.partialorder %v48_v14, inf  ;;  %v71_v32 = vand.u32 2147483648, %v48_v14  ;;  %vm70_vm3 = vcmp.eq.f32.partialorder %v48_v14, 0.0 }
 0x100   :  { %v51_v16 = vmul.f32 %v119_v13, %v50_v15 }
 0x102   :  { %v52_v17 = vmul.f32 0.5, %v51_v16 }
 0x104   :  { %v53_v18 = vsub.f32 1.5, %v52_v17 }
 0x105   :  { %v121_v19 = vpop.eup %120 }
 0x106   :  { %v54_v20 = vmul.f32 %v119_v13, %v53_v18  ;;  %v62_v21 = vmul.f32 %v121_v19, %v48_v14 }
 0x108   :  { %v55_v22 = vmul.f32 %v54_v20, %v47_v11  ;;  %v63_v23 = vmul.f32 %v121_v19, %v62_v21 }
 0x10a   :  { %v64_v25 = vmul.f32 0.5, %v63_v23  ;;  %v57_v26 = vsel %vm56_vm0, %v47_v11, %v55_v22 }
 0x10b   :  { %v60_v27 = vsel %vm58_vm1, %v59_v24, %v57_v26 }
 0x10c   :  { %v65_v28 = vsub.f32 1.5, %v64_v25  ;;  %v73_v29 = vadd.f32 1e-07, %v60_v27 }
 0x10e   :  { %v66_v30 = vmul.f32 %v121_v19, %v65_v28  ;;  %122 = vrcp.f32 %v73_v29 }
 0x110   :  { %v67_v31 = vmul.f32 %v66_v30, %v48_v14 }
 0x112   :  { %v69_v34 = vsel %vm68_vm2, %v48_v14, %v67_v31 }
 0x113   :  { %v72_v35 = vsel %vm70_vm3, %v71_v32, %v69_v34 }
 0x114   :  { %v123_v36 = vpop.eup %122  ;;  %v74_v37 = vadd.f32 1e-07, %v72_v35 }
 0x115   :  { %v81_v38 = vmul.f32 %v123_v36, %v116_v33 }
 0x116   :  { %124 = vrcp.f32 %v74_v37 }
 0x117   :  { %v83_v40 = vmul.f32 %v81_v38, %v39_v4 }
 0x119   :  { %v89_v41 = vadd.f32 %v117_v39, %v83_v40 }
 0x11b   :  { %91 = vst [vmem:[#allocation5] sm:$0xff] %v89_v41 }
 0x11c   :  { %v125_v42 = vpop.eup %124 }
 0x11d   :  { %v82_v43 = vmul.f32 %v125_v42, %v116_v33 }
 0x11f   :  { %v84_v44 = vmul.f32 %v82_v43, %v40_v8 }
 0x121   :  { %v90_v45 = vadd.f32 %v117_v39, %v84_v44 }
 0x123   :  { %92 = vst [vmem:[#allocation5 + $0x8] sm:$0xff] %v90_v45 }
 0x124   :  { %105 = dma.vmem_to_hbm [thread:$0]  %s98_s23, 256, %s100_s25, [#allocation4], %s179_s17, %s179_s17, %s180_s18  }
 0x125   :  { %176 = dma.done.wait [#allocation4], 256  }
 0x126   :  { %177 = vsyncadd [#allocation4], 4294967040 }
 0x127   :  { %110 = vsyncpa [#allocation3], 1 }
 0x128   :  { %111 = vsyncpa [#allocation4], 1 }

</bundles_post_ra>
